<compile_context>
chip_gen: v5e
topology: v5e:2x2
jax: 0.10.0
libtpu: 0.0.40
codegen_flags: <defaults>
</compile_context>

<pallas_src>
import functools

import jax
import jax.numpy as jnp
from jax.experimental import pallas as pl
from jax.experimental.pallas import tpu as pltpu

_LANE = 128
_SUBLANE = 8


def _cdiv(a, b):
    return -(-a // b)


def _round_up(x, m):
    return ((x + m - 1) // m) * m


def _store_tile_loss(part_ref, x, c, *, batch, tile_b):
    """Sum over this tile of log_softmax(x) * c, stored lane-broadcast.

    Full tiles take an unmasked fast path; only the (statically known) ragged
    last tile pays for the row mask.
    """

    def tile_sum(xv, cv):
        m = jnp.max(xv, axis=1, keepdims=True)
        lse = m + jnp.log(jnp.sum(jnp.exp(xv - m), axis=1, keepdims=True))
        return jnp.sum((xv - lse) * cv)

    def store(s):
        part_ref[...] = jnp.full((1, 1, _LANE), s, dtype=jnp.float32)

    if batch % tile_b == 0:            # static: no ragged tile anywhere
        store(tile_sum(x, c))
        return

    i = pl.program_id(0)
    is_last = i == pl.num_programs(0) - 1

    @pl.when(jnp.logical_not(is_last))
    def _():
        store(tile_sum(x, c))

    @pl.when(is_last)
    def _():
        rows = i * tile_b + jax.lax.broadcasted_iota(jnp.int32, (tile_b, 1), 0)
        valid = rows < batch
        store(tile_sum(jnp.where(valid, x, 0.0), jnp.where(valid, c, 0.0)))


def _fused_kernel(idx_ref, out_ref, conf_ref, part_ref, *,
                  batch, tile_b, num_samples):
    """Gather-fused path: the whole confidence table stays resident in VMEM."""
    x = out_ref[...].astype(jnp.float32)                     # (tile_b, C)
    idx = idx_ref[...]                                       # (tile_b, 1) int32
    table = conf_ref[...].astype(jnp.float32)                # (S, C)

    # Row gather as a one-hot matmul on the (otherwise idle) MXU.  The table is
    # split into three exactly-representable bf16 slices so the gathered rows
    # are bit-accurate regardless of f32-matmul pass count.
    sample_ids = jax.lax.broadcasted_iota(jnp.int32, (tile_b, num_samples), 1)
    onehot = jnp.where(idx == sample_ids, 1.0, 0.0).astype(jnp.bfloat16)
    t1 = table.astype(jnp.bfloat16)
    r1 = table - t1.astype(jnp.float32)
    t2 = r1.astype(jnp.bfloat16)
    t3 = (r1 - t2.astype(jnp.float32)).astype(jnp.bfloat16)
    c = (jnp.dot(onehot, t1, preferred_element_type=jnp.float32)
         + jnp.dot(onehot, t2, preferred_element_type=jnp.float32)
         + jnp.dot(onehot, t3, preferred_element_type=jnp.float32))

    _store_tile_loss(part_ref, x, c, batch=batch, tile_b=tile_b)


def _pregathered_kernel(out_ref, conf_ref, part_ref, *, batch, tile_b):
    """Fallback path: confidence[index] was gathered by XLA outside the kernel."""
    x = out_ref[...].astype(jnp.float32)
    c = conf_ref[...].astype(jnp.float32)
    _store_tile_loss(part_ref, x, c, batch=batch, tile_b=tile_b)


def partial_loss_forward(outputs, confidence, index, *,
                         vmem_limit_bytes=32 * 1024 * 1024):
    """average_loss = -(log_softmax(outputs, 1) * confidence[index]).sum(1).mean()"""
    B, C = outputs.shape
    S, C2 = confidence.shape
    assert C == C2, (C, C2)

    c_pad = _round_up(C, _LANE)
    s_pad = _round_up(S, _LANE)
    itemsize = 4  # budget in f32; bf16 operands only shrink the real footprint

    # Padded VMEM-resident table size; fuse the gather only if it fits easily.
    table_bytes = _round_up(S, _SUBLANE) * c_pad * itemsize
    fuse_gather = table_bytes <= 4 * 1024 * 1024

    headroom = 2 * 1024 * 1024
    if fuse_gather:
        # Per batch row: double-buffered logits tile + (tile_b, 1) index block
        # (lane-padded), plus single-copy intermediates (f32 logits, one-hot,
        # gathered confidence).
        per_row = (2 * (c_pad + _LANE) + (s_pad + 2 * c_pad)) * itemsize
        budget = vmem_limit_bytes - 2 * table_bytes - headroom
    else:
        # Per batch row: two double-buffered (tile_b, C) inputs + f32 copies.
        per_row = (2 * 2 * c_pad + 2 * c_pad) * itemsize
        budget = vmem_limit_bytes - headroom

    tile_b = max(_SUBLANE, (budget // per_row) // _SUBLANE * _SUBLANE)
    tile_b = min(tile_b, _round_up(B, _SUBLANE))
    # Keep >= 4 grid steps when the batch allows it: DMA/compute overlap and
    # megacore sharding of the "parallel" axis on v7x need a multi-step grid.
    tile_b = min(tile_b, max(_SUBLANE, _round_up(_cdiv(B, 4), _SUBLANE)))
    num_tiles = _cdiv(B, tile_b)

    out_shape = jax.ShapeDtypeStruct((num_tiles, 1, _LANE), jnp.float32)
    out_specs = pl.BlockSpec((1, 1, _LANE), lambda i: (i, 0, 0))
    compiler_params = pltpu.CompilerParams(
        dimension_semantics=("parallel",),
        vmem_limit_bytes=vmem_limit_bytes,
    )

    if fuse_gather:
        kernel = functools.partial(_fused_kernel, batch=B, tile_b=tile_b,
                                   num_samples=S)
        partials = pl.pallas_call(
            kernel,
            out_shape=out_shape,
            grid_spec=pltpu.PrefetchScalarGridSpec(
                num_scalar_prefetch=0,
                grid=(num_tiles,),
                in_specs=[
                    pl.BlockSpec((tile_b, 1), lambda i: (i, 0)),   # index rows
                    pl.BlockSpec((tile_b, C), lambda i: (i, 0)),   # logits tile
                    pl.BlockSpec((S, C), lambda i: (0, 0)),        # resident table
                ],
                out_specs=out_specs,
            ),
            compiler_params=compiler_params,
        )(index.reshape(B, 1).astype(jnp.int32), outputs, confidence)
    else:
        # TODO(synk): large tables still pay one extra HBM write+read here; a
        #             manual in-kernel DMA row-gather would remove it.
        conf_batch = confidence[index]
        kernel = functools.partial(_pregathered_kernel, batch=B, tile_b=tile_b)
        partials = pl.pallas_call(
            kernel,
            out_shape=out_shape,
            grid_spec=pltpu.PrefetchScalarGridSpec(
                num_scalar_prefetch=0,
                grid=(num_tiles,),
                in_specs=[
                    pl.BlockSpec((tile_b, C), lambda i: (i, 0)),
                    pl.BlockSpec((tile_b, C), lambda i: (i, 0)),
                ],
                out_specs=out_specs,
            ),
            compiler_params=compiler_params,
        )(outputs, conf_batch)

    # Tiny final reduce: one lane per tile, then mean over the true batch size.
    return -jnp.sum(partials[:, 0, 0]) * (1.0 / B)


def _reference_forward(outputs, confidence, index):
    logsm = jax.nn.log_softmax(outputs, axis=1)
    final = logsm * confidence[index, :]
    return -jnp.mean(jnp.sum(final, axis=1))


if __name__ == "__main__":
    key = jax.random.PRNGKey(0)
    k_out, k_conf, k_idx = jax.random.split(key, 3)

    num_samples = 64   # dataset-level confidence table rows
    num_classes = 32
    batch = 10         # deliberately NOT a multiple of 8: exercises the ragged tile

    # Deterministic "parameters": per-sample confidence table (rows sum to 1,
    # as in partial-label learning), mimicking the tensor passed to __init__.
    confidence = jax.nn.softmax(
        jax.random.normal(k_conf, (num_samples, num_classes), dtype=jnp.float32),
        axis=1)

    # Forward inputs.
    outputs = jax.random.normal(k_out, (batch, num_classes), dtype=jnp.float32)
    index = jax.random.randint(k_idx, (batch,), 0, num_samples, dtype=jnp.int32)

    loss = jax.block_until_ready(partial_loss_forward(outputs, confidence, index))

    ref = _reference_forward(outputs, confidence, index)
    assert jnp.allclose(loss, ref, rtol=1e-5, atol=1e-5), (loss, ref)

    print("KERNEL_OK")
</pallas_src>

<mosaic_0001>
module attributes {stable_mosaic.version = 11 : i64} {
  func.func @_fused_kernel(%arg0: i32, %arg1: memref<8x1xi32, #tpu.memory_space<vmem>>, %arg2: memref<8x32xf32, #tpu.memory_space<vmem>>, %arg3: memref<64x32xf32, #tpu.memory_space<vmem>>, %arg4: memref<1x1x128xf32, #tpu.memory_space<vmem>>) attributes {dimension_semantics = [#tpu.dimension_semantics<parallel>], iteration_bounds = array<i64: 2>, scalar_prefetch = 0 : i64, scratch_operands = 0 : i64, tpu.core_type = #tpu.core_type<tc>, window_params = [{transform_indices = @transform_0, window_bounds = array<i64: 8, 1>}, {transform_indices = @transform_1, window_bounds = array<i64: 8, 32>}, {pipeline_mode = #tpu.pipeline_mode<synchronous>, transform_indices = @transform_2, window_bounds = array<i64: 64, 32>}, {transform_indices = @transform_3, window_bounds = array<i64: 1, 1, 128>}]} {
    %c0 = arith.constant 0 : index
    %c0_0 = arith.constant 0 : index
    %0 = vector.load %arg2[%c0, %c0_0] : memref<8x32xf32, #tpu.memory_space<vmem>>, vector<8x32xf32>
    %c0_1 = arith.constant 0 : index
    %c0_2 = arith.constant 0 : index
    %1 = vector.load %arg1[%c0_1, %c0_2] : memref<8x1xi32, #tpu.memory_space<vmem>>, vector<8x1xi32>
    %c0_3 = arith.constant 0 : index
    %c0_4 = arith.constant 0 : index
    %2 = vector.load %arg3[%c0_3, %c0_4] : memref<64x32xf32, #tpu.memory_space<vmem>>, vector<64x32xf32>
    %3 = tpu.iota {dimensions = array<i32: 1>} : vector<8x64xi32>
    %4 = vector.broadcast %1 : vector<8x1xi32> to vector<8x64xi32>
    %5 = arith.cmpi eq, %4, %3 : vector<8x64xi32>
    %cst = arith.constant 1.000000e+00 : f32
    %cst_5 = arith.constant 0.000000e+00 : f32
    %6 = vector.broadcast %cst : f32 to vector<8x64xf32>
    %7 = vector.broadcast %cst_5 : f32 to vector<8x64xf32>
    %8 = arith.select %5, %6, %7 : vector<8x64xi1>, vector<8x64xf32>
    %9 = arith.truncf %8 : vector<8x64xf32> to vector<8x64xbf16>
    %10 = arith.truncf %2 : vector<64x32xf32> to vector<64x32xbf16>
    %11 = arith.extf %10 : vector<64x32xbf16> to vector<64x32xf32>
    %12 = arith.subf %2, %11 : vector<64x32xf32>
    %13 = arith.truncf %12 : vector<64x32xf32> to vector<64x32xbf16>
    %14 = arith.extf %13 : vector<64x32xbf16> to vector<64x32xf32>
    %15 = arith.subf %12, %14 : vector<64x32xf32>
    %16 = arith.truncf %15 : vector<64x32xf32> to vector<64x32xbf16>
    %cst_6 = arith.constant dense<0.000000e+00> : vector<8x32xf32>
    %17 = tpu.matmul %9, %10, %cst_6 {dimension_numbers = #tpu.dot_dimension_numbers<[1], [0], [0], [1], [0, 0, 1, 1], [], []>} : vector<8x64xbf16>, vector<64x32xbf16>, vector<8x32xf32> -> vector<8x32xf32>
    %cst_7 = arith.constant dense<0.000000e+00> : vector<8x32xf32>
    %18 = tpu.matmul %9, %13, %cst_7 {dimension_numbers = #tpu.dot_dimension_numbers<[1], [0], [0], [1], [0, 0, 1, 1], [], []>} : vector<8x64xbf16>, vector<64x32xbf16>, vector<8x32xf32> -> vector<8x32xf32>
    %19 = arith.addf %17, %18 : vector<8x32xf32>
    %cst_8 = arith.constant dense<0.000000e+00> : vector<8x32xf32>
    %20 = tpu.matmul %9, %16, %cst_8 {dimension_numbers = #tpu.dot_dimension_numbers<[1], [0], [0], [1], [0, 0, 1, 1], [], []>} : vector<8x64xbf16>, vector<64x32xbf16>, vector<8x32xf32> -> vector<8x32xf32>
    %21 = arith.addf %19, %20 : vector<8x32xf32>
    %c1_i32 = arith.constant 1 : i32
    %22 = arith.cmpi eq, %arg0, %c1_i32 : i32
    %true = arith.constant true
    %23 = arith.xori %22, %true : i1
    %24 = arith.extui %23 : i1 to i32
    %c0_i32 = arith.constant 0 : i32
    %25 = arith.cmpi ne, %24, %c0_i32 : i32
    scf.if %25 {
      %cst_10 = arith.constant dense<0xFF800000> : vector<8xf32>
      %28 = vector.multi_reduction <maximumf>, %0, %cst_10 [1] : vector<8x32xf32> to vector<8xf32>
      %29 = vector.shape_cast %28 : vector<8xf32> to vector<8x1xf32>
      %30 = vector.broadcast %29 : vector<8x1xf32> to vector<8x32xf32>
      %31 = arith.subf %0, %30 : vector<8x32xf32>
      %32 = math.exp %31 : vector<8x32xf32>
      %cst_11 = arith.constant dense<0.000000e+00> : vector<8xf32>
      %33 = vector.multi_reduction <add>, %32, %cst_11 [1] : vector<8x32xf32> to vector<8xf32>
      %34 = vector.shape_cast %33 : vector<8xf32> to vector<8x1xf32>
      %35 = math.log %34 : vector<8x1xf32>
      %36 = arith.addf %29, %35 : vector<8x1xf32>
      %37 = vector.broadcast %36 : vector<8x1xf32> to vector<8x32xf32>
      %38 = arith.subf %0, %37 : vector<8x32xf32>
      %39 = arith.mulf %38, %21 : vector<8x32xf32>
      %40 = vector.shape_cast %39 : vector<8x32xf32> to vector<1x8x32xf32>
      %cst_12 = arith.constant dense<0.000000e+00> : vector<1xf32>
      %41 = vector.multi_reduction <add>, %40, %cst_12 [1, 2] : vector<1x8x32xf32> to vector<1xf32>
      %42 = vector.shape_cast %41 : vector<1xf32> to vector<1x1x1xf32>
      %43 = vector.extract %42[0, 0, 0] : f32 from vector<1x1x1xf32>
      %44 = vector.broadcast %43 : f32 to vector<1x1x128xf32>
      %c0_13 = arith.constant 0 : index
      %c0_14 = arith.constant 0 : index
      %c0_15 = arith.constant 0 : index
      %45 = vector.load %arg4[%c0_13, %c0_14, %c0_15] : memref<1x1x128xf32, #tpu.memory_space<vmem>>, vector<1x1x128xf32>
      tpu.vector_store %arg4[%c0_13, %c0_14, %c0_15], %44 {strides = array<i32>} : memref<1x1x128xf32, #tpu.memory_space<vmem>>, vector<1x1x128xf32>,
    } else {
    }
    %26 = arith.extui %22 : i1 to i32
    %c0_i32_9 = arith.constant 0 : i32
    %27 = arith.cmpi ne, %26, %c0_i32_9 : i32
    scf.if %27 {
      %c8_i32 = arith.constant 8 : i32
      %28 = arith.muli %arg0, %c8_i32 : i32
      %29 = tpu.iota {dimensions = array<i32: 0>} : vector<8x1xi32>
      %30 = vector.broadcast %28 : i32 to vector<8x1xi32>
      %31 = arith.addi %30, %29 : vector<8x1xi32>
      %c10_i32 = arith.constant 10 : i32
      %32 = vector.broadcast %c10_i32 : i32 to vector<8x1xi32>
      %33 = arith.cmpi slt, %31, %32 : vector<8x1xi32>
      %cst_10 = arith.constant 0.000000e+00 : f32
      %34 = vector.shape_cast %33 : vector<8x1xi1> to vector<8x1xi1>
      %35 = vector.broadcast %34 : vector<8x1xi1> to vector<8x32xi1>
      %36 = vector.broadcast %cst_10 : f32 to vector<8x32xf32>
      %37 = arith.select %35, %0, %36 : vector<8x32xi1>, vector<8x32xf32>
      %cst_11 = arith.constant 0.000000e+00 : f32
      %38 = vector.shape_cast %33 : vector<8x1xi1> to vector<8x1xi1>
      %39 = vector.broadcast %38 : vector<8x1xi1> to vector<8x32xi1>
      %40 = vector.broadcast %cst_11 : f32 to vector<8x32xf32>
      %41 = arith.select %39, %21, %40 : vector<8x32xi1>, vector<8x32xf32>
      %cst_12 = arith.constant dense<0xFF800000> : vector<8xf32>
      %42 = vector.multi_reduction <maximumf>, %37, %cst_12 [1] : vector<8x32xf32> to vector<8xf32>
      %43 = vector.shape_cast %42 : vector<8xf32> to vector<8x1xf32>
      %44 = vector.broadcast %43 : vector<8x1xf32> to vector<8x32xf32>
      %45 = arith.subf %37, %44 : vector<8x32xf32>
      %46 = math.exp %45 : vector<8x32xf32>
      %cst_13 = arith.constant dense<0.000000e+00> : vector<8xf32>
      %47 = vector.multi_reduction <add>, %46, %cst_13 [1] : vector<8x32xf32> to vector<8xf32>
      %48 = vector.shape_cast %47 : vector<8xf32> to vector<8x1xf32>
      %49 = math.log %48 : vector<8x1xf32>
      %50 = arith.addf %43, %49 : vector<8x1xf32>
      %51 = vector.broadcast %50 : vector<8x1xf32> to vector<8x32xf32>
      %52 = arith.subf %37, %51 : vector<8x32xf32>
      %53 = arith.mulf %52, %41 : vector<8x32xf32>
      %54 = vector.shape_cast %53 : vector<8x32xf32> to vector<1x8x32xf32>
      %cst_14 = arith.constant dense<0.000000e+00> : vector<1xf32>
      %55 = vector.multi_reduction <add>, %54, %cst_14 [1, 2] : vector<1x8x32xf32> to vector<1xf32>
      %56 = vector.shape_cast %55 : vector<1xf32> to vector<1x1x1xf32>
      %57 = vector.extract %56[0, 0, 0] : f32 from vector<1x1x1xf32>
      %58 = vector.broadcast %57 : f32 to vector<1x1x128xf32>
      %c0_15 = arith.constant 0 : index
      %c0_16 = arith.constant 0 : index
      %c0_17 = arith.constant 0 : index
      %59 = vector.load %arg4[%c0_15, %c0_16, %c0_17] : memref<1x1x128xf32, #tpu.memory_space<vmem>>, vector<1x1x128xf32>
      tpu.vector_store %arg4[%c0_15, %c0_16, %c0_17], %58 {strides = array<i32>} : memref<1x1x128xf32, #tpu.memory_space<vmem>>, vector<1x1x128xf32>,
    } else {
    }
    return
  }
  func.func @transform_0(%arg0: i32) -> (i32, i32) {
    %c0_i32 = arith.constant 0 : i32
    %c0_i32_0 = arith.constant 0 : i32
    return %arg0, %c0_i32 : i32, i32
  }
  func.func @transform_1(%arg0: i32) -> (i32, i32) {
    %c0_i32 = arith.constant 0 : i32
    %c0_i32_0 = arith.constant 0 : i32
    return %arg0, %c0_i32 : i32, i32
  }
  func.func @transform_2(%arg0: i32) -> (i32, i32) {
    %c0_i32 = arith.constant 0 : i32
    %c0_i32_0 = arith.constant 0 : i32
    %c0_i32_1 = arith.constant 0 : i32
    return %c0_i32, %c0_i32_0 : i32, i32
  }
  func.func @transform_3(%arg0: i32) -> (i32, i32, i32) {
    %c0_i32 = arith.constant 0 : i32
    %c0_i32_0 = arith.constant 0 : i32
    %c0_i32_1 = arith.constant 0 : i32
    return %arg0, %c0_i32, %c0_i32_0 : i32, i32, i32
  }
}

</mosaic_0001>

<bundles_post_ra>
// kernel: tpu_custom_call.1
= control target key start
LH: loop header
LB: loop body
LE: loop exit
PB: predicated region body
PF: predicated region fallthrough
CT: control target
= control target key end

     0   :  { %8 = vsyncpa [#allocation3], 0  ;;  %s792_s0 = inlined_call_operand.vmem [shape: s32[10,1], index: 0, kind: input, shape index: {}]   ;;  %s793_s1 = inlined_call_operand.vmem [shape: f32[10,32], index: 1, kind: input, shape index: {}]   ;;  %s794_s2 = inlined_call_operand.vmem [shape: f32[64,32], index: 2, kind: input, shape index: {}]   ;;  %s795_s3 = inlined_call_operand.hbm [shape: f32[2,1,128], index: 3, kind: output, shape index: {}]  }
   0x1   :  { %10 = vsyncpa [#allocation3 + $0x1], 0  ;;  %s651_s12 = smov 0   ;;  %s653_s13 = smov 0  }
   0x2   :  { %s655_s14 = smov 0   ;;  %s657_s15 = smov 0  }
   0x3 LB: > { %s672_s16 = sadd.s32 4294967295, %s627_s15   ;;  %s497_s17 = sadd.s32 4294967294, %s627_s15   ;;  %s627_s15 = sphi %s657_s15, %s801_s15   ;;  %s623_s14 = sphi %s655_s14, %s800_s14   ;;  %s619_s13 = sphi %s653_s13, %s799_s13   ;;  %s615_s12 = sphi %s651_s12, %s798_s12  }
   0x4   : > { %s676_s18 = sadd.s32 1, %s627_s15   ;;  %s96_s19 = sadd.s32 1, %s623_s14 }
   0x5   : > { %s93_s20 = ssub.s32 %s627_s15, %s676_s18  ;;  %p106_p0 = scmp.ne.s32.totalorder %s623_s14, %s619_s13 }
   0x6   : > { %p94_p1 = scmp.eq.s32.totalorder %s93_s20, 0  ;;  %p107_p2 = scmp.eq.s32.totalorder %s672_s16, 1 }
   0x7   : > { %p112_p3 = scmp.ne.s32.totalorder %s619_s13, %s615_s12  ;;  %p113_p4 = scmp.eq.s32.totalorder %s497_s17, 1 }
   0x8   : > { %s687_s21 = scalar_select %p94_p1, %s623_s14, %s96_s19  }
   0x9   : > { %p691_p5 = por %p107_p2, %p106_p0  ;;  %p695_p6 = por %p113_p4, %p112_p3 }
   0xa   : > { %p500_p7 = scmp.ge.s32.totalorder %s627_s15, 1  ;;  %p148_p8 = scmp.lt.s32.totalorder %s627_s15, 3 }
   0xc   : > { %p149_p9 = pnand %p500_p7, %p148_p8 }
   0xd   : > { %p174_p10 = scmp.lt.s32.totalorder (!%p149_p9), %s672_s16, 1  ;;  %s172_s24 = sand.u32 (!%p149_p9), 1, %s619_s13  }
   0xe   : > { %152 = sbr.rel (%p149_p9) target bundleno = 1195 (0x4ab), region = 32  ;;  %s738_s5 = scalar_lea.vmem (!%p149_p9), [#allocation2], %s172_s24 }
  0x13   : > { %v191_v0 = vld [vmem:[%s794_s2 + $0x30] sm:$0xff]  ;;  %v192_v1 = vld [vmem:[%s794_s2 + $0x38] sm:$0xff]  ;;  %v189_v2 = vld [vmem:[%s794_s2 + $0x20] sm:$0xff]  ;;  %v629_v3 = vmov 0   ;;  %s175_s10 = scalar_select %p174_p10, %s672_s16, 1  ;;  %vm277_vm1 = vcmask 523264  }
  0x14   : > { %556 = vset.pattern.permute.xlu0 %v629_v3  ;;  %v207_v4 = vpack.c.bf16 %v191_v0, %v191_v0  ;;  %v208_v5 = vpack.c.bf16 %v192_v1, %v192_v1  ;;  %v190_v6 = vld [vmem:[%s794_s2 + $0x28] sm:$0xff]  ;;  %v205_v7 = vpack.c.bf16 %v189_v2, %v189_v2  ;;  %v187_v8 = vld [vmem:[%s794_s2 + $0x10] sm:$0xff]  ;;  %v188_v9 = vld [vmem:[%s794_s2 + $0x18] sm:$0xff] }
  0x15   : > { %v206_v10 = vpack.c.bf16 %v190_v6, %v190_v6  ;;  %v203_v11 = vpack.c.bf16 %v187_v8, %v187_v8  ;;  %v204_v12 = vpack.c.bf16 %v188_v9, %v188_v9  ;;  %s501_s11 = sshll.u32 %s175_s10, 3  ;;  %v186_v3 = vld [vmem:[%s794_s2 + $0x8] sm:$0xff] }
  0x16   : > { %v215_v13 = vunpack.c.l.bf16 %v207_v4  ;;  %v216_v14 = vunpack.c.l.bf16 %v208_v5  ;;  %v308_v15 = vunpack.c.l.b16 %v207_v4  ;;  %v309_v16 = vunpack.c.l.b16 %v208_v5  ;;  %s177_s20 = scalar_lea.vmem %s792_s0, %s501_s11  ;;  %s181_s27 = scalar_lea.vmem %s793_s1, %s501_s11 }
  0x17   : > { %v213_v17 = vunpack.c.l.bf16 %v205_v7  ;;  %v214_v18 = vunpack.c.l.bf16 %v206_v10  ;;  %v306_v19 = vunpack.c.l.b16 %v205_v7  ;;  %v307_v20 = vunpack.c.l.b16 %v206_v10  ;;  %v728_v25 = vld [vmem:[%s181_s27] sm:$0xff] }
  0x18   : > { %v223_v21 = vsub.f32 %v191_v0, %v215_v13  ;;  %v224_v22 = vsub.f32 %v192_v1, %v216_v14  ;;  %v313_v23 = vpack.c.b16 %v309_v16, %v308_v15  ;;  %v211_v24 = vunpack.c.l.bf16 %v203_v11  ;;  %v184_v26 = vld [vmem:[%s177_s20] sm:$0xff] }
  0x19   : > { %v221_v27 = vsub.f32 %v189_v2, %v213_v17  ;;  %v222_v28 = vsub.f32 %v190_v6, %v214_v18  ;;  %v312_v29 = vpack.c.b16 %v307_v20, %v306_v19  ;;  %v212_v30 = vunpack.c.l.bf16 %v204_v12  ;;  %196 = vperm.xlu0 %556, %v184_v26   ;;  %v185_v2 = vld [vmem:[%s794_s2] sm:$0xff] }
  0x1a   : > { %v231_v31 = vpack.c.bf16 %v223_v21, %v223_v21  ;;  %v232_v32 = vpack.c.bf16 %v224_v22, %v224_v22  ;;  %322 = vmatpush.bf16.msra.mxu1 %v313_v23  ;;  %v219_v33 = vsub.f32 %v187_v8, %v211_v24  ;;  %v304_v34 = vunpack.c.l.b16 %v203_v11 }
  0x1b   : > { %v229_v35 = vpack.c.bf16 %v221_v27, %v221_v27  ;;  %v230_v36 = vpack.c.bf16 %v222_v28, %v222_v28  ;;  %v220_v37 = vsub.f32 %v188_v9, %v212_v30  ;;  %v305_v38 = vunpack.c.l.b16 %v204_v12 }
  0x1c   : > { %v267_v39 = vunpack.c.l.b16 %v231_v31  ;;  %v268_v40 = vunpack.c.l.b16 %v232_v32  ;;  %v239_v41 = vunpack.c.l.bf16 %v231_v31  ;;  %v240_v42 = vunpack.c.l.bf16 %v232_v32 }
  0x1d   : > { %v265_v43 = vunpack.c.l.b16 %v229_v35  ;;  %v266_v44 = vunpack.c.l.b16 %v230_v36  ;;  %v237_v45 = vunpack.c.l.bf16 %v229_v35  ;;  %v238_v46 = vunpack.c.l.bf16 %v230_v36 }
  0x1e   : > { %v272_v47 = vpack.c.b16 %v268_v40, %v267_v39  ;;  %v247_v48 = vsub.f32 %v223_v21, %v239_v41  ;;  %v248_v49 = vsub.f32 %v224_v22, %v240_v42  ;;  %323 = vmatpush.bf16.msra.mxu1 %v312_v29  ;;  %v227_v50 = vpack.c.bf16 %v219_v33, %v219_v33 }
  0x1f   : > { %v271_v51 = vpack.c.b16 %v266_v44, %v265_v43  ;;  %v245_v52 = vsub.f32 %v221_v27, %v237_v45  ;;  %v246_v53 = vsub.f32 %v222_v28, %v238_v46  ;;  %v228_v54 = vpack.c.bf16 %v220_v37, %v220_v37 }
  0x20   : > { %285 = vmatpush.bf16.msra.mxu0 %v272_v47  ;;  %v252_v55 = vpack.c.bf16 %v248_v49, %v247_v48  ;;  %v263_v56 = vunpack.c.l.b16 %v227_v50  ;;  %v311_v57 = vpack.c.b16 %v305_v38, %v304_v34  ;;  %v235_v58 = vunpack.c.l.bf16 %v227_v50 }
  0x21   : > { %v264_v59 = vunpack.c.l.b16 %v228_v54  ;;  %v236_v60 = vunpack.c.l.bf16 %v228_v54  ;;  %v251_v61 = vpack.c.bf16 %v246_v53, %v245_v52  ;;  %v201_v4 = vpack.c.bf16 %v185_v2, %v185_v2 }
  0x22   : > { %335 = vmatpush.bf16.msra.mxu2 %v252_v55  ;;  %324 = vmatpush.bf16.msra.mxu1 %v311_v57  ;;  %v243_v62 = vsub.f32 %v219_v33, %v235_v58  ;;  %v202_v5 = vpack.c.bf16 %v186_v3, %v186_v3  ;;  %v193_v23 = vlaneseq  ;;  %v630_v27 = vmov 0.0  }
  0x23   : > { %v244_v63 = vsub.f32 %v220_v37, %v236_v60  ;;  %v270_v0 = vpack.c.b16 %v264_v59, %v263_v56  ;;  %v209_v6 = vunpack.c.l.bf16 %v201_v4  ;;  %v302_v16 = vunpack.c.l.b16 %v201_v4 }
  0x24   : > { %286 = vmatpush.bf16.msra.mxu0 %v271_v51  ;;  %v210_v7 = vunpack.c.l.bf16 %v202_v5  ;;  %v303_v17 = vunpack.c.l.b16 %v202_v5  ;;  %v194_v24 = vand.u32 127, %v193_v23 }
  0x25   : > { %v250_v1 = vpack.c.bf16 %v244_v63, %v243_v62  ;;  %v217_v8 = vsub.f32 %v185_v2, %v209_v6 }
  0x26   : > { %336 = vmatpush.bf16.msra.mxu2 %v251_v61  ;;  %v218_v9 = vsub.f32 %v186_v3, %v210_v7  ;;  %v310_v21 = vpack.c.b16 %v303_v17, %v302_v16 }
  0x27   : > { %v225_v10 = vpack.c.bf16 %v217_v8, %v217_v8 }
  0x28   : > { %287 = vmatpush.bf16.msra.mxu0 %v270_v0  ;;  %v226_v11 = vpack.c.bf16 %v218_v9, %v218_v9  ;;  %325 = vmatpush.bf16.msra.mxu1 %v310_v21 }
  0x29   : > { %v233_v12 = vunpack.c.l.bf16 %v225_v10  ;;  %v261_v14 = vunpack.c.l.b16 %v225_v10 }
  0x2a   : > { %337 = vmatpush.bf16.msra.mxu2 %v250_v1  ;;  %v234_v13 = vunpack.c.l.bf16 %v226_v11  ;;  %v262_v15 = vunpack.c.l.b16 %v226_v11 }
  0x2b   : > { %v241_v18 = vsub.f32 %v217_v8, %v233_v12 }
  0x2c   : > { %v242_v19 = vsub.f32 %v218_v9, %v234_v13  ;;  %v269_v20 = vpack.c.b16 %v262_v15, %v261_v14 }
  0x2e   : > { %v249_v22 = vpack.c.bf16 %v242_v19, %v241_v18  ;;  %288 = vmatpush.bf16.msra.mxu0 %v269_v20 }
  0x30   : > { %338 = vmatpush.bf16.msra.mxu2 %v249_v22 }
  0x8b   : > { %v197_v26 = vpop.permute.xlu0 %196 }
  0x8c   : > { %vm198_vm0 = vcmp.eq.s32.totalorder %v197_v26, %v194_v24 }
  0x8d   : > { %v199_v28 = vsel %vm198_vm0, 1.0, %v630_v27 }
  0x8e   : > { %v200_v29 = vpack.c.bf16 %v199_v28, %v199_v28 }
  0x90   : > { %503 = vmatmul.msk.bf16.vlgmr.msra.gmra.mxu0 %vm277_vm1, %v200_v29  ;;  %504 = vmatmul.msk.bf16.vlgmr.msra.gmra.mxu1 %vm277_vm1, %v200_v29 }
  0x91   : > { %505 = vmatmul.msk.bf16.vlgmr.msra.gmra.mxu2 %vm277_vm1, %v200_v29 }
 0x10d   : > { %v290_v30 = vpop.f32.mrf.mxu0  ;;  %v327_v31 = vpop.f32.mrf.mxu1 }
 0x10e   : > { %v328_v32 = vadd.f32 %v327_v31, %v290_v30 }
 0x114   : > { %v340_v33 = vpop.f32.mrf.mxu2 }
 0x115   : > { %v344_v34 = vadd.f32 %v340_v33, %v328_v32  ;;  %v292_v35 = vpop.f32.mrf.mxu0  ;;  %v329_v36 = vpop.f32.mrf.mxu1 }
 0x118   : > { %349 = sbr.rel (%p107_p2) target bundleno = 727 (0x2d7), region = 36 }
 0x11c   : > { %v342_v37 = vpop.f32.mrf.mxu2 }
 0x11d   : > { %vm350_vm2 = vcmask 261120  }
 0x11e   : > { %v351_v38 = vsel %vm350_vm2, %v728_v25, -inf }
 0x11f   : > { %352 = vmax.xlane.f32.xlu0 %v351_v38 }
 0x192   : > { %v353_v39 = vpop.xlane.xlu0 %352 }
 0x193   : > { %v354_v40 = vsub.f32 %v728_v25, %v353_v39 }
 0x195   : > { %v355_v41 = vmul.f32 1.442695, %v354_v40 }
 0x197   : > { %557 = vpow2.f32 %v355_v41 }
 0x19d   : > { %v558_v42 = vpop.eup %557 }
 0x19e   : > { %v357_v43 = vsel %vm350_vm2, %v558_v42, 0.0 }
 0x19f   : > { %358 = vadd.xlane.f32.xlu0 %v357_v43 }
 0x212   : > { %v359_v44 = vpop.xlane.xlu0 %358 }
 0x213   : > { %559 = vlog2.f32 %v359_v44 }
 0x219   : > { %v560_v45 = vpop.eup %559 }
 0x21a   : > { %v361_v46 = vmul.f32 0.6931472, %v560_v45 }
 0x21c   : > { %v362_v47 = vadd.f32 %v361_v46, %v353_v39 }
 0x21e   : > { %v363_v48 = vsub.f32 %v728_v25, %v362_v47 }
 0x220   : > { %v364_v49 = vmul.f32 %v363_v48, %v344_v34 }
 0x222   : > { %v365_v50 = vsel %vm350_vm2, %v364_v49, 0.0 }
 0x223   : > { %366 = vadd.xlane.f32.xlu1 %v365_v50 }
 0x296   : > { %v367_v51 = vpop.xlane.xlu1 %366 }
 0x297   : > { %v368_v52 = vrot.slane %v367_v51, 4 }
 0x299   : > { %v369_v53 = vadd.f32 %v368_v52, %v367_v51 }
 0x29b   : > { %v370_v54 = vrot.slane %v369_v53, 2 }
 0x29d   : > { %v371_v55 = vadd.f32 %v370_v54, %v369_v53 }
 0x29f   : > { %v372_v56 = vrot.slane %v371_v55, 1 }
 0x2a1   : > { %v373_v57 = vadd.f32 %v372_v56, %v371_v55 }
 0x2a3   : > { %511 = vpush %v373_v57 }
 0x2d4   : > { %s512_s6 = spop %511 }
 0x2d5   : > { %v375_v58 = vstv %s512_s6 }
 0x2d6   : > { %376 = vst [vmem:[%s738_s5] sm:$0x1] %v375_v58 }
 0x2d7 PF: > { %p507_p11 = scmp.ne.s32.totalorder %s672_s16, 1 }
 0x2d8   : > { %s508_s7 = sshll.u32 (!%p507_p11), %s672_s16, 3 }
 0x2d9   : > { %379 = sbr.rel (%p507_p11) target bundleno = 1181 (0x49d), region = 40 }
 0x2de   : > { %v382_v59 = vshrl.u32 %v193_v23, 7  ;;  %v383_v60 = vstv %s508_s7  ;;  %vm390_vm3 = vcmask 261120  }
 0x2e0   : > { %v384_v61 = vadd.s32 %v383_v60, %v382_v59 }
 0x2e2   : > { %vm385_vm4 = vcmp.lt.s32.totalorder %v384_v61, 10 }
 0x2e3   : > { %v388_v62 = vsel %vm385_vm4, %v728_v25, 0.0  ;;  %v389_v9 = vsel %vm385_vm4, %v344_v34, 0.0 }
 0x2e4   : > { %v391_v63 = vsel %vm390_vm3, %v388_v62, -inf }
 0x2e5   : > { %392 = vmax.xlane.f32.xlu0 %v391_v63 }
 0x358   : > { %v393_v0 = vpop.xlane.xlu0 %392 }
 0x359   : > { %v394_v1 = vsub.f32 %v388_v62, %v393_v0 }
 0x35b   : > { %v395_v2 = vmul.f32 1.442695, %v394_v1 }
 0x35d   : > { %561 = vpow2.f32 %v395_v2 }
 0x363   : > { %v562_v3 = vpop.eup %561 }
 0x364   : > { %v397_v4 = vsel %vm390_vm3, %v562_v3, 0.0 }
 0x365   : > { %398 = vadd.xlane.f32.xlu0 %v397_v4 }
 0x3d8   : > { %v399_v5 = vpop.xlane.xlu0 %398 }
 0x3d9   : > { %563 = vlog2.f32 %v399_v5 }
 0x3df   : > { %v564_v6 = vpop.eup %563 }
 0x3e0   : > { %v401_v7 = vmul.f32 0.6931472, %v564_v6 }
 0x3e2   : > { %v402_v8 = vadd.f32 %v401_v7, %v393_v0 }
 0x3e4   : > { %v403_v25 = vsub.f32 %v388_v62, %v402_v8 }
 0x3e6   : > { %v404_v10 = vmul.f32 %v403_v25, %v389_v9 }
 0x3e8   : > { %v405_v11 = vsel %vm390_vm3, %v404_v10, 0.0 }
 0x3e9   : > { %406 = vadd.xlane.f32.xlu1 %v405_v11 }
 0x45c   : > { %v407_v12 = vpop.xlane.xlu1 %406 }
 0x45d   : > { %v408_v13 = vrot.slane %v407_v12, 4 }
 0x45f   : > { %v409_v14 = vadd.f32 %v408_v13, %v407_v12 }
 0x461   : > { %v410_v15 = vrot.slane %v409_v14, 2 }
 0x463   : > { %v411_v16 = vadd.f32 %v410_v15, %v409_v14 }
 0x465   : > { %v412_v17 = vrot.slane %v411_v16, 1 }
 0x467   : > { %v413_v18 = vadd.f32 %v412_v17, %v411_v16 }
 0x469   : > { %513 = vpush %v413_v18 }
 0x49a   : > { %s514_s8 = spop %513 }
 0x49b   : > { %v415_v19 = vstv %s514_s8 }
 0x49c   : > { %416 = vst [vmem:[%s738_s5] sm:$0x1] %v415_v19 }
 0x49d PF: > { %s426_s11 = scalar_lea.hbm %s795_s3, %s672_s16  ;;  %s428_s17 = sshll.u32 %s738_s5, 4  ;;  %s429_s17 = int_to_ptr.vmem [resolvable:$true] %s428_s17 }
 0x49e   : > { %s430_s19 = sshll.u32 %s426_s11, 4  ;;  %s418_s20 = scalar_lea.sflag [#allocation3], %s172_s24  ;;  %s431_s19 = int_to_ptr.hbm [resolvable:$true] %s430_s19 }
 0x49f   : > { %s579_s25 = sshra.s32 %s431_s19, 4  ;;  %s585_s29 = scalar_lea.hbm %s795_s3, 2  ;;  %s580_s25 = int_to_ptr.hbm [resolvable:$true] %s579_s25 }
 0x4a0   : > { %s581_s26 = scalar_lea.hbm %s580_s25, 1  ;;  %p586_p1 = scmp.lt.s32.totalorder %s580_s25, %s795_s3 }
 0x4a1   : > { %p582_p12 = scmp.ne.s32.totalorder %s580_s25, %s581_s26  ;;  %p587_p2 = scmp.lt.s32.totalorder %s585_s29, %s581_s26 }
 0x4a3   : > { %p583_p13 = pnand %p582_p12, %p691_p5  ;;  %p588_p3 = por %p587_p2, %p586_p1 }
 0x4a5   : > { %p584_p0 = pneg %p583_p13 }
 0x4a7   : > { %p589_p4 = pnand %p588_p3, %p584_p0 }
 0x4a9   : > { %592 = shalt.err (!%p589_p4)
}
 0x4aa   : > { %515 = dma.vmem_to_hbm [thread:$0]  (%p691_p5), %s429_s17, 16, %s431_s19, %s418_s20  }
 0x4ab PF: > { %p521_p7 = scmp.ge.s32.totalorder %s627_s15, 2  ;;  %s442_s16 = sand.u32 1, %s615_s12  }
 0x4ac   : > { %s443_s24 = scalar_lea.sflag [#allocation3], %s442_s16 }
 0x4ad   : > { %p518_p8 = pnand %p521_p7, %p695_p6 }
 0x4af   : > { %p519_p9 = pneg %p518_p8 }
 0x4b1   : > { %610 = dma.done.wait (%p519_p9), %s443_s24, 16  }
 0x4b2   : > { %612 = vsyncadd (%p519_p9), %s443_s24, 4294967280  ;;  %p13_p10 = scmp.ge.s32.totalorder %s676_s18, 4   ;;  %s798_s12 = smov %s619_s13 }
 0x4b3   : > { %s799_s13 = smov %s623_s14  ;;  %s800_s14 = smov %s687_s21 }
 0x4b4   : > { %s801_s15 = smov %s676_s18  ;;  %15 = sbr.rel (!%p13_p10) target bundleno = 3 (0x3), region = 78 }
 0x4b9   :  { %448 = vsyncpa [#allocation3], 1 }
 0x4ba   :  { %450 = vsyncpa [#allocation3 + $0x1], 1 }

</bundles_post_ra>
